<compile_context>
chip_gen: v5e
topology: v5e:2x2
jax: 0.10.0
libtpu: 0.0.40
codegen_flags: <defaults>
</compile_context>

<pallas_src>
import jax
import jax.numpy as jnp
from jax.experimental import pallas as pl
from jax.experimental.pallas import tpu as pltpu


def _copy_kernel(x_ref, o_ref):
    # Identity copy through VMEM (the only "compute" a materialized reshape implies).
    o_ref[...] = x_ref[...]


# Wide lanes first: a lane-dense output slab is the biggest single lever on TPU.
_LANE_CANDIDATES = (8192, 4096, 2048, 1024, 512, 256, 128)

# Keep each block <= ~4 MiB: with double-buffered input + output blocks the
# pipeline needs ~4x this (~16 MiB), inside every chip's scoped-VMEM budget
# once vmem_limit_bytes is raised to 32 MiB (v5e/v6e physical VMEM is 128 MiB,
# v7x is 64 MiB, so 32 MiB of scratch is always safe).
_MAX_BLOCK_BYTES = 4 * 1024 * 1024
_VMEM_LIMIT_BYTES = 32 * 1024 * 1024


def _choose_tiling(total_elems, itemsize):
    """Pick (lane_width, rows, row_tile) for a flattened (rows, lane) slab.

    Returns None if the element count cannot be laid out as a safe,
    lane/sublane-aligned slab (caller then uses the free metadata reshape).
    """
    # Sub-32-bit dtypes pack along sublanes: f32 -> 8, bf16 -> 16, int8 -> 32.
    sub = 8 * max(1, 4 // max(1, itemsize))

    # Prefer a lane width that also leaves a sublane-pack-multiple row count.
    lane = None
    for cand in _LANE_CANDIDATES:
        if total_elems % cand == 0 and (total_elems // cand) % sub == 0:
            lane = cand
            break
    if lane is None:
        for cand in _LANE_CANDIDATES:
            if total_elems % cand == 0:
                lane = cand
                break
    if lane is None:
        return None

    rows = total_elems // lane

    if rows % sub == 0:
        # Largest sublane-multiple row tile that divides rows and fits the byte cap.
        max_tr = max(sub, (_MAX_BLOCK_BYTES // (lane * itemsize)) // sub * sub)
        tr = sub
        c = (min(rows, max_tr) // sub) * sub
        while c >= sub:
            if rows % c == 0:
                tr = c
                break
            c -= sub
    else:
        # Full-dim escape hatch: only allow it for tensors small enough that a
        # single block (double-buffered, both sides) comfortably fits VMEM.
        if 4 * rows * lane * itemsize > _VMEM_LIMIT_BYTES:
            return None
        tr = rows

    return lane, rows, tr


def reshape_forward(x, reshape_to):
    """Equivalent of torch Reshape(reshape_to)(x) == x.view(x.size(0), *reshape_to)."""
    n = x.shape[0]
    flat_len = 1
    for d in x.shape[1:]:
        flat_len *= d

    target_flat = 1
    for d in reshape_to:
        target_flat *= d
    assert target_flat == flat_len, (
        f"reshape_to {reshape_to} incompatible with per-batch size {flat_len}"
    )

    total = n * flat_len
    itemsize = jnp.dtype(x.dtype).itemsize
    tiling = _choose_tiling(total, itemsize)

    if tiling is None:
        # Reshape is metadata-only in XLA; no kernel needed for odd/huge-ragged sizes.
        return x.reshape((n, *reshape_to))

    lane, rows, tr = tiling

    # Fold the batch axis into the row axis -> sublane/lane-dense (rows, lane) slab.
    x2d = x.reshape(rows, lane)

    out2d = pl.pallas_call(
        _copy_kernel,
        out_shape=jax.ShapeDtypeStruct((rows, lane), x.dtype),
        grid_spec=pltpu.PrefetchScalarGridSpec(
            num_scalar_prefetch=0,
            grid=(max(1, rows // tr),),
            in_specs=[pl.BlockSpec((tr, lane), lambda i: (i, 0))],
            out_specs=pl.BlockSpec((tr, lane), lambda i: (i, 0)),
        ),
        compiler_params=pltpu.CompilerParams(
            # Row-tile axis is independent -> lets v7x's two TensorCores split
            # the copy; no-op on single-TC v5e/v6e.
            dimension_semantics=("parallel",),
            vmem_limit_bytes=_VMEM_LIMIT_BYTES,
        ),
        # Alias input -> output so XLA may elide the physical copy when the
        # input buffer is dead (matches torch .view aliasing semantics).
        input_output_aliases={0: 0},
    )(x2d)

    # Metadata-only reshape (glue), matching torch .view output shape exactly.
    return out2d.reshape((n, *reshape_to))


if __name__ == "__main__":
    key = jax.random.PRNGKey(0)

    # Small NCHW input consistent with a conv-style tensor.
    N, C, H, W = 2, 4, 16, 16
    x = jax.random.normal(key, (N, C, H, W), dtype=jnp.float32)
    reshape_to = (16, 64)

    y = reshape_forward(x, reshape_to)
    y = jax.block_until_ready(y)

    ref = x.reshape(N, *reshape_to)
    assert y.shape == (N, *reshape_to), (y.shape, (N, *reshape_to))
    assert y.dtype == x.dtype
    assert bool(jnp.all(y == ref))

    # Second check: bf16 dtype (exercises the 16-row sublane-pack logic).
    x2 = jax.random.normal(jax.random.PRNGKey(1), (2, 16, 64, 128), dtype=jnp.bfloat16)
    reshape_to2 = (16 * 64, 128)
    y2 = jax.block_until_ready(reshape_forward(x2, reshape_to2))
    ref2 = x2.reshape(2, *reshape_to2)
    assert y2.shape == ref2.shape and y2.dtype == x2.dtype
    assert bool(jnp.all(y2 == ref2))

    # Third check: odd per-batch size -> falls back to the free metadata reshape.
    x3 = jax.random.normal(jax.random.PRNGKey(2), (2, 3, 5, 7), dtype=jnp.float32)
    reshape_to3 = (105,)
    y3 = jax.block_until_ready(reshape_forward(x3, reshape_to3))
    ref3 = x3.reshape(2, *reshape_to3)
    assert y3.shape == ref3.shape and bool(jnp.all(y3 == ref3))

    print("KERNEL_OK")
</pallas_src>

<mosaic_0001>
module attributes {stable_mosaic.version = 11 : i64} {
  func.func @_copy_kernel(%arg0: i32, %arg1: memref<8x256xf32, #tpu.memory_space<vmem>>, %arg2: memref<8x256xf32, #tpu.memory_space<vmem>>) attributes {dimension_semantics = [#tpu.dimension_semantics<parallel>], iteration_bounds = array<i64: 1>, scalar_prefetch = 0 : i64, scratch_operands = 0 : i64, tpu.core_type = #tpu.core_type<tc>, window_params = [{transform_indices = @transform_0, window_bounds = array<i64: 8, 256>}, {transform_indices = @transform_1, window_bounds = array<i64: 8, 256>}]} {
    %c0 = arith.constant 0 : index
    %c0_0 = arith.constant 0 : index
    %0 = vector.load %arg1[%c0, %c0_0] : memref<8x256xf32, #tpu.memory_space<vmem>>, vector<8x256xf32>
    %c0_1 = arith.constant 0 : index
    %c0_2 = arith.constant 0 : index
    %1 = vector.load %arg2[%c0_1, %c0_2] : memref<8x256xf32, #tpu.memory_space<vmem>>, vector<8x256xf32>
    tpu.vector_store %arg2[%c0_1, %c0_2], %0 {strides = array<i32>} : memref<8x256xf32, #tpu.memory_space<vmem>>, vector<8x256xf32>,
    return
  }
  func.func @transform_0(%arg0: i32) -> (i32, i32) {
    %c0_i32 = arith.constant 0 : i32
    %c0_i32_0 = arith.constant 0 : i32
    return %arg0, %c0_i32 : i32, i32
  }
  func.func @transform_1(%arg0: i32) -> (i32, i32) {
    %c0_i32 = arith.constant 0 : i32
    %c0_i32_0 = arith.constant 0 : i32
    return %arg0, %c0_i32 : i32, i32
  }
}

</mosaic_0001>

<bundles_post_ra>
// kernel: tpu_custom_call.1
= control target key start
LH: loop header
LB: loop body
LE: loop exit
PB: predicated region body
PF: predicated region fallthrough
CT: control target
= control target key end

     0   :  { %6 = vsyncpa [#allocation3], 0  ;;  %s116_s0 = inlined_call_operand.hbm [shape: f32[8,256], index: 0, kind: input, shape index: {}, may-alias: {0,1}]   ;;  %s117_s1 = inlined_call_operand.hbm [shape: f32[8,256], index: 1, kind: output, shape index: {}, may-alias: {0,1}]  }
   0x1   :  { %7 = vsyncpa [#allocation4], 0  ;;  %s13_s8 = sshll.u32 %s116_s0, 4  ;;  %s98_s9 = smov [#allocation2]   ;;  %s14_s8 = int_to_ptr.hbm [resolvable:$true] %s13_s8 }
   0x2   :  { %s15_s10 = sshll.u32 %s98_s9, 4  ;;  %s16_s10 = int_to_ptr.vmem [resolvable:$true] %s15_s10 }
   0x3   :  { %18 = dma.hbm_to_vmem [thread:$0]  %s14_s8, 256, %s16_s10, [#allocation3]  }
   0x4   :  { %94 = dma.done.wait [#allocation3], 256  }
   0x5   :  { %95 = vsyncadd [#allocation3], 4294967040  ;;  %s99_s11 = smov [#allocation5]   ;;  %s34_s15 = sshll.u32 %s117_s1, 4  ;;  %v23_v0 = vld [vmem:[#allocation2] sm:$0xff]  ;;  %v24_v1 = vld [vmem:[#allocation2 + $0x8] sm:$0xff]  ;;  %s35_s15 = int_to_ptr.hbm [resolvable:$true] %s34_s15 }
   0x6   :  { %s32_s12 = sshll.u32 %s99_s11, 4  ;;  %25 = vst [vmem:[#allocation5] sm:$0xff] %v23_v0  ;;  %s33_s12 = int_to_ptr.vmem [resolvable:$true] %s32_s12 }
   0x7   :  { %26 = vst [vmem:[#allocation5 + $0x8] sm:$0xff] %v24_v1 }
   0x8   :  { %37 = dma.vmem_to_hbm [thread:$0]  %s33_s12, 256, %s35_s15, [#allocation4]  }
   0x9   :  { %96 = dma.done.wait [#allocation4], 256  }
   0xa   :  { %97 = vsyncadd [#allocation4], 4294967040 }
   0xb   :  { %42 = vsyncpa [#allocation3], 1 }
   0xc   :  { %43 = vsyncpa [#allocation4], 1 }

</bundles_post_ra>
